<compile_context>
chip_gen: v5e
topology: v5e:2x2
jax: 0.10.0
libtpu: 0.0.40
codegen_flags: <defaults>
</compile_context>

<pallas_src>
import functools
from typing import NamedTuple

import jax
import jax.numpy as jnp
from jax.experimental import pallas as pl
from jax.experimental.pallas import tpu as pltpu

EPS = 1e-5  # PyTorch BatchNorm1d default eps.


def _round_up(x, m):
    return (x + m - 1) // m * m


class _Plan(NamedTuple):
    batch: int
    d: int        # true flattened feature size
    o: int        # true output size
    d_pad: int
    o_pad: int
    tile_o: int
    tile_k: int
    nk: int
    vmem_limit: int


def _make_plan(batch, d, o, *, tile_o=256, tile_k=1024, mxu_bytes=2,
               vmem_budget=28 << 20):
    """Pick lane-dense tiles that fit a conservative VMEM budget (v7x-safe)."""
    tile_o = min(tile_o, _round_up(o, 128))
    d128 = _round_up(d, 128)
    # Collapse the reduction axis when D is modest: x is DMA'd once and stays
    # resident; no accumulator init/finalize branches are needed.
    tile_k = d128 if d128 <= max(tile_k, 2048) else min(tile_k, d128)

    def est(t_k, t_o):
        x_b = 2 * max(batch, 8) * t_k * mxu_bytes    # double-buffered x block
        w_b = 2 * t_k * t_o * mxu_bytes              # double-buffered weight block
        o_b = 2 * max(batch, 8) * t_o * 4            # f32 output block / accumulator
        bias_b = 2 * 8 * t_o * 4
        epi_b = 3 * max(batch, 8) * t_o * 4          # epilogue temporaries headroom
        return x_b + w_b + o_b + bias_b + epi_b

    while est(tile_k, tile_o) > vmem_budget and tile_k > 128:
        tile_k = _round_up(tile_k // 2, 128)
    while est(tile_k, tile_o) > vmem_budget and tile_o > 128:
        tile_o = _round_up(tile_o // 2, 128)
    # TODO(synk): very large batches need batch tiling plus a two-pass BatchNorm
    # (per-tile sum / sum-of-squares then normalize); not implemented here.

    d_pad = _round_up(d, tile_k)
    o_pad = _round_up(o, tile_o)
    nk = d_pad // tile_k
    vmem_limit = int(min(100 << 20, max(32 << 20, 2 * est(tile_k, tile_o))))
    return _Plan(batch, d, o, d_pad, o_pad, tile_o, tile_k, nk, vmem_limit)


def _fused_epilogue(z, scale, n):
    """bias already added: input_bn -> tanh*scale -> hyperop(order=2) -> output_bn."""
    inv_n = 1.0 / float(n)
    # input_bn: training-mode batch stats, biased variance, gamma=1, beta=0.
    mu = jnp.sum(z, axis=0, keepdims=True) * inv_n
    var = jnp.maximum(jnp.sum(z * z, axis=0, keepdims=True) * inv_n - mu * mu, 0.0)
    z = (z - mu) * jax.lax.rsqrt(var + EPS)
    # tanh * scale (scalar parameter read from SMEM).
    z = jnp.tanh(z) * scale
    # apply_hyperoperation(order=2, n=2): scale by 1/2^(order-1)=0.5, then square.
    # TODO(synk): hyperoperation orders 3/4 (tetration/pentation) not implemented.
    z = z * 0.5
    z = z * z
    # output_bn: training-mode batch stats, gamma=1, beta=0.
    mu2 = jnp.sum(z, axis=0, keepdims=True) * inv_n
    var2 = jnp.maximum(jnp.sum(z * z, axis=0, keepdims=True) * inv_n - mu2 * mu2, 0.0)
    z = (z - mu2) * jax.lax.rsqrt(var2 + EPS)
    # activation is None in the reference module.
    return z


def _hypertensor_kernel_1d(x_ref, wt_ref, b_ref, scale_ref, o_ref):
    # grid = (O tiles,). Whole contraction is resident (x index map constant),
    # so every output tile is computed and written exactly once.
    z = jnp.dot(x_ref[...], wt_ref[...], preferred_element_type=jnp.float32)
    z = z + b_ref[...]
    o_ref[...] = _fused_epilogue(z, scale_ref[0, 0], z.shape[0]).astype(o_ref.dtype)


def _hypertensor_kernel_2d(x_ref, wt_ref, b_ref, scale_ref, o_ref, *, nk):
    # grid = (O tiles [parallel], K tiles [arbitrary]). The f32 output block has
    # a constant block index across k, so it doubles as the accumulator.
    k = pl.program_id(1)

    @pl.when(k == 0)
    def _():
        o_ref[...] = jnp.broadcast_to(b_ref[...], o_ref.shape)

    o_ref[...] += jnp.dot(x_ref[...], wt_ref[...], preferred_element_type=jnp.float32)

    @pl.when(k == nk - 1)
    def _():
        o_ref[...] = _fused_epilogue(o_ref[...], scale_ref[0, 0], o_ref.shape[0])


def prepare_hypertensor(weight, bias, *, batch_size, tile_o=256, tile_k=1024,
                        mxu_dtype=jnp.bfloat16):
    """One-time weight layout prep: transpose, pad, cast (hoist out of hot path)."""
    o = weight.shape[0]
    d = 1
    for s in weight.shape[1:]:
        d *= s
    plan = _make_plan(batch_size, d, o, tile_o=tile_o, tile_k=tile_k,
                      mxu_bytes=jnp.dtype(mxu_dtype).itemsize)
    w_t = weight.reshape(o, d).T.astype(mxu_dtype)                    # (D, O)
    w_p = jnp.zeros((plan.d_pad, plan.o_pad), mxu_dtype).at[:d, :o].set(w_t)
    b_p = jnp.zeros((1, plan.o_pad), jnp.float32).at[0, :o].set(
        bias.astype(jnp.float32))
    return plan, w_p, b_p


@functools.partial(jax.jit, static_argnames=("plan",))
def hypertensor_apply(x, w_p, b_p, scale, *, plan):
    """Jitted per-call path: pad/cast x (fused by XLA), pallas_call, slice."""
    p = plan
    b = x.shape[0]
    x_flat = x.reshape(b, -1).astype(w_p.dtype)
    if p.d_pad != p.d:
        x_flat = jnp.pad(x_flat, ((0, 0), (0, p.d_pad - p.d)))
    s2 = scale.reshape(1, 1).astype(jnp.float32)                      # SMEM scalar

    x_reads = 1 if p.nk == 1 else p.o_pad // p.tile_o
    cost = pl.CostEstimate(
        flops=2 * b * p.d_pad * p.o_pad,
        transcendentals=b * p.o_pad + 2 * p.o_pad,                    # tanh + rsqrt
        bytes_accessed=(x_reads * b * p.d_pad * jnp.dtype(w_p.dtype).itemsize
                        + p.d_pad * p.o_pad * jnp.dtype(w_p.dtype).itemsize
                        + p.o_pad * 4 + 4
                        + b * p.o_pad * 4))

    common = dict(
        out_shape=jax.ShapeDtypeStruct((b, p.o_pad), jnp.float32),
        cost_estimate=cost)

    if p.nk == 1:
        out = pl.pallas_call(
            _hypertensor_kernel_1d,
            grid=(p.o_pad // p.tile_o,),
            in_specs=[
                pl.BlockSpec((b, p.d_pad), lambda o: (0, 0)),         # x resident
                pl.BlockSpec((p.d_pad, p.tile_o), lambda o: (0, o)),  # weight^T
                pl.BlockSpec((1, p.tile_o), lambda o: (0, o)),        # bias
                pl.BlockSpec(memory_space=pltpu.MemorySpace.SMEM),    # scale
            ],
            out_specs=pl.BlockSpec((b, p.tile_o), lambda o: (0, o)),
            compiler_params=pltpu.CompilerParams(
                dimension_semantics=("parallel",),
                vmem_limit_bytes=p.vmem_limit),
            **common,
        )(x_flat, w_p, b_p, s2)
    else:
        # TODO(synk): in this (large-D) branch x is still re-fetched once per O
        # tile; removing that needs a batch-tiled two-pass BatchNorm split.
        kernel = functools.partial(_hypertensor_kernel_2d, nk=p.nk)
        out = pl.pallas_call(
            kernel,
            grid=(p.o_pad // p.tile_o, p.nk),
            in_specs=[
                pl.BlockSpec((b, p.tile_k), lambda o, k: (0, k)),
                pl.BlockSpec((p.tile_k, p.tile_o), lambda o, k: (k, o)),
                pl.BlockSpec((1, p.tile_o), lambda o, k: (0, o)),
                pl.BlockSpec(memory_space=pltpu.MemorySpace.SMEM),
            ],
            out_specs=pl.BlockSpec((b, p.tile_o), lambda o, k: (0, o)),
            compiler_params=pltpu.CompilerParams(
                dimension_semantics=("parallel", "arbitrary"),
                vmem_limit_bytes=p.vmem_limit),
            **common,
        )(x_flat, w_p, b_p, s2)

    return out[:, :p.o] if p.o_pad != p.o else out


def hypertensor_layer(x, weight, bias, scale, **kwargs):
    """Convenience single-shot wrapper (prepare weights, then apply)."""
    plan, w_p, b_p = prepare_hypertensor(weight, bias, batch_size=x.shape[0],
                                         **kwargs)
    return hypertensor_apply(x, w_p, b_p, scale, plan=plan)


def _reference(x, weight, bias, scale):
    """Pure-JAX f32 reference matching the PyTorch forward (order=2, train mode)."""
    b = x.shape[0]
    o = weight.shape[0]
    z = (x.reshape(b, -1).astype(jnp.float32)
         @ weight.reshape(o, -1).T.astype(jnp.float32))
    z = z + bias.astype(jnp.float32)
    mu = z.mean(0, keepdims=True)
    var = ((z - mu) ** 2).mean(0, keepdims=True)
    z = (z - mu) / jnp.sqrt(var + EPS)
    z = jnp.tanh(z) * scale.astype(jnp.float32)[0]
    z = (z * 0.5) ** 2
    mu2 = z.mean(0, keepdims=True)
    var2 = ((z - mu2) ** 2).mean(0, keepdims=True)
    z = (z - mu2) / jnp.sqrt(var2 + EPS)
    return z


if __name__ == "__main__":
    # Module config consistent with the PyTorch __init__:
    #   input_shape=(4, 16, 16), output_size=32, hyperoperation_order=2
    input_shape = (4, 16, 16)
    output_size = 32
    hyper_order = 2
    batch = 2

    key = jax.random.PRNGKey(0)
    kx, kw = jax.random.split(key)

    param_scale = 0.01 / (2 ** (hyper_order - 1))
    x = jax.random.normal(kx, (batch,) + input_shape, dtype=jnp.float32)
    weight = jax.random.normal(kw, (output_size,) + input_shape,
                               dtype=jnp.float32) * param_scale
    bias = jnp.zeros((output_size,), dtype=jnp.float32)
    scale = jnp.ones((1,), dtype=jnp.float32) * param_scale

    # One-time weight prep, then the jitted hot path.
    plan, w_p, b_p = prepare_hypertensor(weight, bias, batch_size=batch)
    out = hypertensor_apply(x, w_p, b_p, scale, plan=plan)
    jax.block_until_ready(out)

    assert out.shape == (batch, output_size)
    assert bool(jnp.all(jnp.isfinite(out)))

    ref = _reference(x, weight, bias, scale)
    assert bool(jnp.allclose(out, ref, atol=1e-2)), "mismatch vs pure-JAX reference"

    print("KERNEL_OK")
</pallas_src>

<mosaic_0001>
module attributes {stable_mosaic.version = 11 : i64} {
  func.func @_hypertensor_kernel_1d(%arg0: i32, %arg1: memref<2x1024xbf16, #tpu.memory_space<vmem>>, %arg2: memref<1024x128xbf16, #tpu.memory_space<vmem>>, %arg3: memref<1x128xf32, #tpu.memory_space<vmem>>, %arg4: memref<1x1xf32, #tpu.memory_space<smem>>, %arg5: memref<2x128xf32, #tpu.memory_space<vmem>>) attributes {dimension_semantics = [#tpu.dimension_semantics<parallel>], iteration_bounds = array<i64: 1>, scalar_prefetch = 0 : i64, scratch_operands = 0 : i64, tpu.core_type = #tpu.core_type<tc>, window_params = [{pipeline_mode = #tpu.pipeline_mode<synchronous>, transform_indices = @transform_0, window_bounds = array<i64: 2, 1024>}, {transform_indices = @transform_1, window_bounds = array<i64: 1024, 128>}, {transform_indices = @transform_2, window_bounds = array<i64: 1, 128>}, {transform_indices = @transform_3, window_bounds = array<i64: 1, 1>}, {transform_indices = @transform_4, window_bounds = array<i64: 2, 128>}]} {
    %c0 = arith.constant 0 : index
    %c0_0 = arith.constant 0 : index
    %0 = vector.load %arg1[%c0, %c0_0] : memref<2x1024xbf16, #tpu.memory_space<vmem>>, vector<2x1024xbf16>
    %c0_1 = arith.constant 0 : index
    %c0_2 = arith.constant 0 : index
    %1 = vector.load %arg2[%c0_1, %c0_2] : memref<1024x128xbf16, #tpu.memory_space<vmem>>, vector<1024x128xbf16>
    %cst = arith.constant dense<0.000000e+00> : vector<2x128xf32>
    %2 = tpu.matmul %0, %1, %cst {dimension_numbers = #tpu.dot_dimension_numbers<[1], [0], [0], [1], [0, 0, 1, 1], [], []>} : vector<2x1024xbf16>, vector<1024x128xbf16>, vector<2x128xf32> -> vector<2x128xf32>
    %c0_3 = arith.constant 0 : index
    %c0_4 = arith.constant 0 : index
    %3 = vector.load %arg3[%c0_3, %c0_4] : memref<1x128xf32, #tpu.memory_space<vmem>>, vector<1x128xf32>
    %4 = vector.broadcast %3 : vector<1x128xf32> to vector<2x128xf32>
    %5 = arith.addf %2, %4 : vector<2x128xf32>
    %c0_5 = arith.constant 0 : index
    %c0_6 = arith.constant 0 : index
    %6 = memref.load %arg4[%c0_5, %c0_6] : memref<1x1xf32, #tpu.memory_space<smem>>
    %cst_7 = arith.constant dense<0.000000e+00> : vector<128xf32>
    %7 = vector.multi_reduction <add>, %5, %cst_7 [0] : vector<2x128xf32> to vector<128xf32>
    %8 = vector.shape_cast %7 : vector<128xf32> to vector<1x128xf32>
    %cst_8 = arith.constant 5.000000e-01 : f32
    %9 = vector.broadcast %cst_8 : f32 to vector<1x128xf32>
    %10 = arith.mulf %8, %9 : vector<1x128xf32>
    %11 = arith.mulf %5, %5 : vector<2x128xf32>
    %cst_9 = arith.constant dense<0.000000e+00> : vector<128xf32>
    %12 = vector.multi_reduction <add>, %11, %cst_9 [0] : vector<2x128xf32> to vector<128xf32>
    %13 = vector.shape_cast %12 : vector<128xf32> to vector<1x128xf32>
    %cst_10 = arith.constant 5.000000e-01 : f32
    %14 = vector.broadcast %cst_10 : f32 to vector<1x128xf32>
    %15 = arith.mulf %13, %14 : vector<1x128xf32>
    %16 = arith.mulf %10, %10 : vector<1x128xf32>
    %17 = arith.subf %15, %16 : vector<1x128xf32>
    %cst_11 = arith.constant 0.000000e+00 : f32
    %18 = vector.broadcast %cst_11 : f32 to vector<1x128xf32>
    %19 = arith.maximumf %17, %18 : vector<1x128xf32>
    %20 = vector.broadcast %10 : vector<1x128xf32> to vector<2x128xf32>
    %21 = arith.subf %5, %20 : vector<2x128xf32>
    %cst_12 = arith.constant 9.99999974E-6 : f32
    %22 = vector.broadcast %cst_12 : f32 to vector<1x128xf32>
    %23 = arith.addf %19, %22 : vector<1x128xf32>
    %24 = math.rsqrt %23 : vector<1x128xf32>
    %25 = vector.broadcast %24 : vector<1x128xf32> to vector<2x128xf32>
    %26 = arith.mulf %21, %25 : vector<2x128xf32>
    %27 = math.tanh %26 : vector<2x128xf32>
    %28 = vector.broadcast %6 : f32 to vector<2x128xf32>
    %29 = arith.mulf %27, %28 : vector<2x128xf32>
    %cst_13 = arith.constant 5.000000e-01 : f32
    %30 = vector.broadcast %cst_13 : f32 to vector<2x128xf32>
    %31 = arith.mulf %29, %30 : vector<2x128xf32>
    %32 = arith.mulf %31, %31 : vector<2x128xf32>
    %cst_14 = arith.constant dense<0.000000e+00> : vector<128xf32>
    %33 = vector.multi_reduction <add>, %32, %cst_14 [0] : vector<2x128xf32> to vector<128xf32>
    %34 = vector.shape_cast %33 : vector<128xf32> to vector<1x128xf32>
    %cst_15 = arith.constant 5.000000e-01 : f32
    %35 = vector.broadcast %cst_15 : f32 to vector<1x128xf32>
    %36 = arith.mulf %34, %35 : vector<1x128xf32>
    %37 = arith.mulf %32, %32 : vector<2x128xf32>
    %cst_16 = arith.constant dense<0.000000e+00> : vector<128xf32>
    %38 = vector.multi_reduction <add>, %37, %cst_16 [0] : vector<2x128xf32> to vector<128xf32>
    %39 = vector.shape_cast %38 : vector<128xf32> to vector<1x128xf32>
    %cst_17 = arith.constant 5.000000e-01 : f32
    %40 = vector.broadcast %cst_17 : f32 to vector<1x128xf32>
    %41 = arith.mulf %39, %40 : vector<1x128xf32>
    %42 = arith.mulf %36, %36 : vector<1x128xf32>
    %43 = arith.subf %41, %42 : vector<1x128xf32>
    %cst_18 = arith.constant 0.000000e+00 : f32
    %44 = vector.broadcast %cst_18 : f32 to vector<1x128xf32>
    %45 = arith.maximumf %43, %44 : vector<1x128xf32>
    %46 = vector.broadcast %36 : vector<1x128xf32> to vector<2x128xf32>
    %47 = arith.subf %32, %46 : vector<2x128xf32>
    %cst_19 = arith.constant 9.99999974E-6 : f32
    %48 = vector.broadcast %cst_19 : f32 to vector<1x128xf32>
    %49 = arith.addf %45, %48 : vector<1x128xf32>
    %50 = math.rsqrt %49 : vector<1x128xf32>
    %51 = vector.broadcast %50 : vector<1x128xf32> to vector<2x128xf32>
    %52 = arith.mulf %47, %51 : vector<2x128xf32>
    %c0_20 = arith.constant 0 : index
    %c0_21 = arith.constant 0 : index
    %53 = vector.load %arg5[%c0_20, %c0_21] : memref<2x128xf32, #tpu.memory_space<vmem>>, vector<2x128xf32>
    tpu.vector_store %arg5[%c0_20, %c0_21], %52 {strides = array<i32>} : memref<2x128xf32, #tpu.memory_space<vmem>>, vector<2x128xf32>,
    return
  }
  func.func @transform_0(%arg0: i32) -> (i32, i32) {
    %c0_i32 = arith.constant 0 : i32
    %c0_i32_0 = arith.constant 0 : i32
    %c0_i32_1 = arith.constant 0 : i32
    return %c0_i32, %c0_i32_0 : i32, i32
  }
  func.func @transform_1(%arg0: i32) -> (i32, i32) {
    %c0_i32 = arith.constant 0 : i32
    %c0_i32_0 = arith.constant 0 : i32
    return %c0_i32, %arg0 : i32, i32
  }
  func.func @transform_2(%arg0: i32) -> (i32, i32) {
    %c0_i32 = arith.constant 0 : i32
    %c0_i32_0 = arith.constant 0 : i32
    return %c0_i32, %arg0 : i32, i32
  }
  func.func @transform_3(%arg0: i32) -> (i32, i32) {
    %c0_i32 = arith.constant 0 : i32
    %c0_i32_0 = arith.constant 0 : i32
    %c0_i32_1 = arith.constant 0 : i32
    return %c0_i32, %c0_i32_0 : i32, i32
  }
  func.func @transform_4(%arg0: i32) -> (i32, i32) {
    %c0_i32 = arith.constant 0 : i32
    %c0_i32_0 = arith.constant 0 : i32
    return %c0_i32, %arg0 : i32, i32
  }
}

</mosaic_0001>

<bundles_post_ra>
// kernel: hypertensor_apply.1
= control target key start
LH: loop header
LB: loop body
LE: loop exit
PB: predicated region body
PF: predicated region fallthrough
CT: control target
= control target key end

     0   :  { %10 = vsyncpa [#allocation4], 0  ;;  %s1196_s0 = inlined_call_operand.vmem [shape: bf16[2,1024], index: 0, kind: input, shape index: {}]   ;;  %s1197_s1 = inlined_call_operand.hbm [shape: bf16[1024,128], index: 1, kind: input, shape index: {}]   ;;  %s1198_s2 = inlined_call_operand.vmem [shape: f32[1,128], index: 2, kind: input, shape index: {}]   ;;  %s1199_s3 = inlined_call_operand.<no memory space> [shape: f32[1,1], index: 3, kind: input, shape index: {}]   ;;  %s1200_s4 = inlined_call_operand.hbm [shape: f32[2,128], index: 4, kind: output, shape index: {}]  }
   0x1   :  { %11 = vsyncpa [#allocation5], 0  ;;  %s18_s17 = sshll.u32 %s1197_s1, 4  ;;  %s1148_s18 = smov [#allocation3]   ;;  %s19_s17 = int_to_ptr.hbm [resolvable:$true] %s18_s17 }
   0x2   :  { %s20_s19 = sshll.u32 %s1148_s18, 4  ;;  %s1149_s20 = smov 64   ;;  %s21_s19 = int_to_ptr.vmem [resolvable:$true] %s20_s19 }
   0x3   :  { %s1150_s21 = smov 4  }
   0x4   :  { %26 = dma.hbm_to_vmem [thread:$0]  %s19_s17, 8192, %s21_s19, [#allocation4], %s1149_s20, %s1149_s20, %s1150_s21  }
   0x5   :  { %1144 = dma.done.wait [#allocation4], 8192  }
   0x6   :  { %1145 = vsyncadd [#allocation4], 4294959104  ;;  %v1028_v0 = vld [vmem:[#allocation3 + $0x38] sm:$0xff]  ;;  %v1027_v4 = vld [vmem:[#allocation3 + $0x30] sm:$0xff]  ;;  %vm675_vm0 = vcmask 1041408   ;;  %s755_s28 = sshll.u32 %s1200_s4, 4  ;;  %s756_s28 = int_to_ptr.hbm [resolvable:$true] %s755_s28 }
   0x7   :  { %v1036_v1 = vld [vmem:[#allocation3 + $0x78] sm:$0xff]  ;;  %570 = vmatpush.bf16.msra.mxu0 %v1028_v0  ;;  %v1035_v5 = vld [vmem:[#allocation3 + $0x70] sm:$0xff]  ;;  %v1026_v8 = vld [vmem:[#allocation3 + $0x28] sm:$0xff] }
   0x8   :  { %v1044_v2 = vld [vmem:[#allocation3 + $0xb8] sm:$0xff]  ;;  %583 = vmatpush.bf16.msra.mxu1 %v1036_v1  ;;  %v1043_v6 = vld [vmem:[#allocation3 + $0xb0] sm:$0xff]  ;;  %v1034_v9 = vld [vmem:[#allocation3 + $0x68] sm:$0xff] }
   0x9   :  { %v1052_v3 = vld [vmem:[#allocation3 + $0xf8] sm:$0xff]  ;;  %596 = vmatpush.bf16.msra.mxu2 %v1044_v2  ;;  %v1051_v7 = vld [vmem:[#allocation3 + $0xf0] sm:$0xff]  ;;  %v1042_v10 = vld [vmem:[#allocation3 + $0xa8] sm:$0xff] }
   0xa   :  { %609 = vmatpush.bf16.msra.mxu3 %v1052_v3  ;;  %v1050_v11 = vld [vmem:[#allocation3 + $0xe8] sm:$0xff]  ;;  %v1025_v12 = vld [vmem:[#allocation3 + $0x20] sm:$0xff]  ;;  %v35_v16 = vld [vmem:[%s1196_s0] sm:$0xff] }
   0xb   :  { %571 = vmatpush.bf16.msra.mxu0 %v1027_v4  ;;  %v1033_v13 = vld [vmem:[#allocation3 + $0x60] sm:$0xff]  ;;  %v1024_v17 = vld [vmem:[#allocation3 + $0x18] sm:$0xff]  ;;  %169 = vst [vmem:[#allocation1] ss:$9 sm:$0xff] %v35_v16  ;;  %v1023_v21 = vld [vmem:[#allocation3 + $0x10] sm:$0xff] }
   0xc   :  { %584 = vmatpush.bf16.msra.mxu1 %v1035_v5  ;;  %v1041_v14 = vld [vmem:[#allocation3 + $0xa0] sm:$0xff]  ;;  %v1032_v18 = vld [vmem:[#allocation3 + $0x58] sm:$0xff]  ;;  %v1031_v22 = vld [vmem:[#allocation3 + $0x50] sm:$0xff] }
   0xd   :  { %597 = vmatpush.bf16.msra.mxu2 %v1043_v6  ;;  %v1049_v15 = vld [vmem:[#allocation3 + $0xe0] sm:$0xff]  ;;  %v1040_v19 = vld [vmem:[#allocation3 + $0x98] sm:$0xff]  ;;  %v1039_v23 = vld [vmem:[#allocation3 + $0x90] sm:$0xff] }
   0xe   :  { %610 = vmatpush.bf16.msra.mxu3 %v1051_v7  ;;  %v1048_v20 = vld [vmem:[#allocation3 + $0xd8] sm:$0xff]  ;;  %v1047_v24 = vld [vmem:[#allocation3 + $0xd0] sm:$0xff]  ;;  %v1022_v25 = vld [vmem:[#allocation3 + $0x8] sm:$0xff] }
   0xf   :  { %572 = vmatpush.bf16.msra.mxu0 %v1026_v8  ;;  %v1030_v26 = vld [vmem:[#allocation3 + $0x48] sm:$0xff]  ;;  %v1021_v29 = vld [vmem:[#allocation3] sm:$0xff]  ;;  %v1060_v33 = vld [vmem:[#allocation3 + $0x138] sm:$0xff] }
  0x10   :  { %585 = vmatpush.bf16.msra.mxu1 %v1034_v9  ;;  %v1038_v27 = vld [vmem:[#allocation3 + $0x88] sm:$0xff]  ;;  %v1029_v30 = vld [vmem:[#allocation3 + $0x40] sm:$0xff]  ;;  %v1068_v34 = vld [vmem:[#allocation3 + $0x178] sm:$0xff] }
  0x11   :  { %598 = vmatpush.bf16.msra.mxu2 %v1042_v10  ;;  %v1046_v28 = vld [vmem:[#allocation3 + $0xc8] sm:$0xff]  ;;  %v1037_v31 = vld [vmem:[#allocation3 + $0x80] sm:$0xff]  ;;  %v1076_v35 = vld [vmem:[#allocation3 + $0x1b8] sm:$0xff] }
  0x12   :  { %611 = vmatpush.bf16.msra.mxu3 %v1050_v11  ;;  %v1045_v32 = vld [vmem:[#allocation3 + $0xc0] sm:$0xff]  ;;  %v1084_v36 = vld [vmem:[#allocation3 + $0x1f8] sm:$0xff]  ;;  %v1059_v37 = vld [vmem:[#allocation3 + $0x130] sm:$0xff] }
  0x13   :  { %573 = vmatpush.bf16.msra.mxu0 %v1025_v12  ;;  %v172_v38 = vld [vmem:[#allocation1 + $0x12] sm:$0xff]  ;;  %v170_v39 = vld [vmem:[#allocation1] sm:$0xff]  ;;  %v171_v42 = vld [vmem:[#allocation1 + $0x9] sm:$0xff] }
  0x14   :  { %586 = vmatpush.bf16.msra.mxu1 %v1033_v13  ;;  %v1067_v40 = vld [vmem:[#allocation3 + $0x170] sm:$0xff]  ;;  %v1058_v45 = vld [vmem:[#allocation3 + $0x128] sm:$0xff]  ;;  %v1057_v49 = vld [vmem:[#allocation3 + $0x120] sm:$0xff] }
  0x15   :  { %599 = vmatpush.bf16.msra.mxu2 %v1041_v14  ;;  %v173_v41 = vld [vmem:[#allocation1 + $0x1b] sm:$0xff]  ;;  %v1066_v46 = vld [vmem:[#allocation3 + $0x168] sm:$0xff]  ;;  %v1065_v50 = vld [vmem:[#allocation3 + $0x160] sm:$0xff] }
  0x16   :  { %612 = vmatpush.bf16.msra.mxu3 %v1049_v15  ;;  %v1075_v43 = vld [vmem:[#allocation3 + $0x1b0] sm:$0xff]  ;;  %v1074_v47 = vld [vmem:[#allocation3 + $0x1a8] sm:$0xff]  ;;  %v1073_v51 = vld [vmem:[#allocation3 + $0x1a0] sm:$0xff] }
  0x17   :  { %574 = vmatpush.bf16.msra.mxu0 %v1024_v17  ;;  %v1083_v44 = vld [vmem:[#allocation3 + $0x1f0] sm:$0xff]  ;;  %v1082_v48 = vld [vmem:[#allocation3 + $0x1e8] sm:$0xff]  ;;  %v1081_v52 = vld [vmem:[#allocation3 + $0x1e0] sm:$0xff] }
  0x18   :  { %587 = vmatpush.bf16.msra.mxu1 %v1032_v18  ;;  %v1056_v53 = vld [vmem:[#allocation3 + $0x118] sm:$0xff]  ;;  %v1055_v57 = vld [vmem:[#allocation3 + $0x110] sm:$0xff]  ;;  %v1054_v61 = vld [vmem:[#allocation3 + $0x108] sm:$0xff] }
  0x19   :  { %600 = vmatpush.bf16.msra.mxu2 %v1040_v19  ;;  %v1064_v54 = vld [vmem:[#allocation3 + $0x158] sm:$0xff]  ;;  %v1063_v58 = vld [vmem:[#allocation3 + $0x150] sm:$0xff]  ;;  %v1062_v62 = vld [vmem:[#allocation3 + $0x148] sm:$0xff] }
  0x1a   :  { %613 = vmatpush.bf16.msra.mxu3 %v1048_v20  ;;  %v1072_v55 = vld [vmem:[#allocation3 + $0x198] sm:$0xff]  ;;  %v1071_v59 = vld [vmem:[#allocation3 + $0x190] sm:$0xff]  ;;  %v1070_v63 = vld [vmem:[#allocation3 + $0x188] sm:$0xff] }
  0x1b   :  { %575 = vmatpush.bf16.msra.mxu0 %v1023_v21  ;;  %v1080_v56 = vld [vmem:[#allocation3 + $0x1d8] sm:$0xff]  ;;  %v1079_v60 = vld [vmem:[#allocation3 + $0x1d0] sm:$0xff]  ;;  %v1078_v0 = vld [vmem:[#allocation3 + $0x1c8] sm:$0xff] }
  0x1c   :  { %588 = vmatpush.bf16.msra.mxu1 %v1031_v22  ;;  %v1053_v1 = vld [vmem:[#allocation3 + $0x100] sm:$0xff]  ;;  %v176_v7 = vld [vmem:[#allocation1 + $0x36] sm:$0xff]  ;;  %v177_v8 = vld [vmem:[#allocation1 + $0x3f] sm:$0xff] }
  0x1d   :  { %601 = vmatpush.bf16.msra.mxu2 %v1039_v23  ;;  %v1061_v2 = vld [vmem:[#allocation3 + $0x140] sm:$0xff]  ;;  %v1089_v15 = vld [vmem:[%s1198_s2] ss:$0 sm:$0xff] }
  0x1e   :  { %614 = vmatpush.bf16.msra.mxu3 %v1047_v24  ;;  %v1069_v3 = vld [vmem:[#allocation3 + $0x180] sm:$0xff] }
  0x1f   :  { %576 = vmatpush.bf16.msra.mxu0 %v1022_v25  ;;  %v1077_v4 = vld [vmem:[#allocation3 + $0x1c0] sm:$0xff] }
  0x20   :  { %589 = vmatpush.bf16.msra.mxu1 %v1030_v26  ;;  %v174_v5 = vld [vmem:[#allocation1 + $0x24] sm:$0xff]  ;;  %v175_v6 = vld [vmem:[#allocation1 + $0x2d] sm:$0xff] }
  0x21   :  { %602 = vmatpush.bf16.msra.mxu2 %v1038_v27 }
  0x22   :  { %615 = vmatpush.bf16.msra.mxu3 %v1046_v28 }
  0x23   :  { %577 = vmatpush.bf16.msra.mxu0 %v1021_v29 }
  0x24   :  { %590 = vmatpush.bf16.msra.mxu1 %v1029_v30 }
  0x25   :  { %603 = vmatpush.bf16.msra.mxu2 %v1037_v31 }
  0x26   :  { %616 = vmatpush.bf16.msra.mxu3 %v1045_v32  ;;  %578 = vmatmul.bf16.vlgmr.msra.gmra.mxu0 %v170_v39 }
  0x27   :  { %622 = vmatpush.bf16.msrb.mxu0 %v1060_v33  ;;  %591 = vmatmul.bf16.vlgmr.msra.gmra.mxu1 %v171_v42 }
  0x28   :  { %635 = vmatpush.bf16.msrb.mxu1 %v1068_v34  ;;  %604 = vmatmul.bf16.vlgmr.msra.gmra.mxu2 %v172_v38 }
  0x29   :  { %648 = vmatpush.bf16.msrb.mxu2 %v1076_v35  ;;  %617 = vmatmul.bf16.vlgmr.msra.gmra.mxu3 %v173_v41 }
  0x2a   :  { %661 = vmatpush.bf16.msrb.mxu3 %v1084_v36 }
  0x2b   :  { %623 = vmatpush.bf16.msrb.mxu0 %v1059_v37 }
  0x2c   :  { %636 = vmatpush.bf16.msrb.mxu1 %v1067_v40 }
  0x2d   :  { %649 = vmatpush.bf16.msrb.mxu2 %v1075_v43 }
  0x2e   :  { %662 = vmatpush.bf16.msrb.mxu3 %v1083_v44 }
  0x2f   :  { %624 = vmatpush.bf16.msrb.mxu0 %v1058_v45 }
  0x30   :  { %637 = vmatpush.bf16.msrb.mxu1 %v1066_v46 }
  0x31   :  { %650 = vmatpush.bf16.msrb.mxu2 %v1074_v47 }
  0x32   :  { %663 = vmatpush.bf16.msrb.mxu3 %v1082_v48 }
  0x33   :  { %625 = vmatpush.bf16.msrb.mxu0 %v1057_v49 }
  0x34   :  { %638 = vmatpush.bf16.msrb.mxu1 %v1065_v50 }
  0x35   :  { %651 = vmatpush.bf16.msrb.mxu2 %v1073_v51 }
  0x36   :  { %664 = vmatpush.bf16.msrb.mxu3 %v1081_v52 }
  0x37   :  { %626 = vmatpush.bf16.msrb.mxu0 %v1056_v53 }
  0x38   :  { %639 = vmatpush.bf16.msrb.mxu1 %v1064_v54 }
  0x39   :  { %652 = vmatpush.bf16.msrb.mxu2 %v1072_v55 }
  0x3a   :  { %665 = vmatpush.bf16.msrb.mxu3 %v1080_v56 }
  0x3b   :  { %627 = vmatpush.bf16.msrb.mxu0 %v1055_v57 }
  0x3c   :  { %640 = vmatpush.bf16.msrb.mxu1 %v1063_v58 }
  0x3d   :  { %653 = vmatpush.bf16.msrb.mxu2 %v1071_v59 }
  0x3e   :  { %666 = vmatpush.bf16.msrb.mxu3 %v1079_v60 }
  0x3f   :  { %628 = vmatpush.bf16.msrb.mxu0 %v1054_v61 }
  0x40   :  { %641 = vmatpush.bf16.msrb.mxu1 %v1062_v62 }
  0x41   :  { %654 = vmatpush.bf16.msrb.mxu2 %v1070_v63 }
  0x42   :  { %667 = vmatpush.bf16.msrb.mxu3 %v1078_v0  ;;  %v710_v0 = vstv %s1199_s3  ;;  %s1151_s3 = smov [#allocation6]  }
  0x43   :  { %629 = vmatpush.bf16.msrb.mxu0 %v1053_v1  ;;  %s753_s25 = sshll.u32 %s1151_s3, 4  ;;  %s754_s25 = int_to_ptr.vmem [resolvable:$true] %s753_s25 }
  0x44   :  { %642 = vmatpush.bf16.msrb.mxu1 %v1061_v2 }
  0x45   :  { %655 = vmatpush.bf16.msrb.mxu2 %v1069_v3 }
  0x46   :  { %668 = vmatpush.bf16.msrb.mxu3 %v1077_v4  ;;  %630 = vmatmul.bf16.vlgmr.msrb.gmra.mxu0 %v174_v5 }
  0x47   :  { %643 = vmatmul.bf16.vlgmr.msrb.gmra.mxu1 %v175_v6 }
  0x48   :  { %656 = vmatmul.bf16.vlgmr.msrb.gmra.mxu2 %v176_v7 }
  0x49   :  { %669 = vmatmul.bf16.vlgmr.msrb.gmra.mxu3 %v177_v8 }
  0xa3   :  { %v579_v9 = vpop.f32.mrf.mxu0 }
  0xa4   :  { %v592_v10 = vpop.f32.mrf.mxu1  ;;  %v580_v18 = vadd.f32 %v1089_v15, %v579_v9 }
  0xa6   :  { %v593_v19 = vadd.f32 %v592_v10, %v580_v18 }
  0xab   :  { %v605_v11 = vpop.f32.mrf.mxu2  ;;  %v581_v13 = vpop.f32.mrf.mxu0 }
  0xac   :  { %v618_v12 = vpop.f32.mrf.mxu3  ;;  %v594_v14 = vpop.f32.mrf.mxu1  ;;  %v606_v20 = vadd.f32 %v605_v11, %v593_v19 }
  0xae   :  { %v619_v21 = vadd.f32 %v618_v12, %v606_v20 }
  0xb3   :  { %v607_v16 = vpop.f32.mrf.mxu2 }
  0xb4   :  { %v620_v17 = vpop.f32.mrf.mxu3 }
  0xc3   :  { %v631_v22 = vpop.f32.mrf.mxu0 }
  0xc4   :  { %v644_v23 = vpop.f32.mrf.mxu1  ;;  %v632_v24 = vadd.f32 %v631_v22, %v619_v21 }
  0xc6   :  { %v645_v25 = vadd.f32 %v644_v23, %v632_v24 }
  0xcb   :  { %v657_v26 = vpop.f32.mrf.mxu2  ;;  %v633_v29 = vpop.f32.mrf.mxu0 }
  0xcc   :  { %v670_v27 = vpop.f32.mrf.mxu3  ;;  %v658_v28 = vadd.f32 %v657_v26, %v645_v25  ;;  %v646_v30 = vpop.f32.mrf.mxu1 }
  0xce   :  { %v671_v31 = vadd.f32 %v670_v27, %v658_v28 }
  0xd0   :  { %v676_v32 = vsel %vm675_vm0, %v671_v31, 0.0  ;;  %v684_v33 = vmul.f32 %v671_v31, %v671_v31 }
  0xd1   :  { %v677_v34 = vrot.slane %v676_v32, 4 }
  0xd2   :  { %v685_v35 = vsel %vm675_vm0, %v684_v33, 0.0 }
  0xd3   :  { %v678_v36 = vadd.f32 %v677_v34, %v676_v32  ;;  %v686_v37 = vrot.slane %v685_v35, 4  ;;  %v659_v38 = vpop.f32.mrf.mxu2 }
  0xd4   :  { %v672_v39 = vpop.f32.mrf.mxu3 }
  0xd5   :  { %v679_v40 = vrot.slane %v678_v36, 2  ;;  %v687_v41 = vadd.f32 %v686_v37, %v685_v35 }
  0xd7   :  { %v680_v42 = vadd.f32 %v679_v40, %v678_v36  ;;  %v688_v43 = vrot.slane %v687_v41, 2 }
  0xd9   :  { %v681_v44 = vrot.slane %v680_v42, 1  ;;  %v689_v45 = vadd.f32 %v688_v43, %v687_v41 }
  0xdb   :  { %v682_v46 = vadd.f32 %v681_v44, %v680_v42  ;;  %v690_v47 = vrot.slane %v689_v45, 1 }
  0xdd   :  { %v683_v48 = vmul.f32 0.5, %v682_v46  ;;  %v691_v49 = vadd.f32 %v690_v47, %v689_v45 }
  0xdf   :  { %v692_v50 = vmul.f32 0.5, %v691_v49  ;;  %v693_v51 = vmul.f32 %v683_v48, %v683_v48  ;;  %v696_v61 = vsub.f32 %v671_v31, %v683_v48 }
  0xe1   :  { %v694_v52 = vsub.f32 %v692_v50, %v693_v51 }
  0xe3   :  { %v695_v53 = vmax.f32 %v694_v52, 0.0 }
  0xe5   :  { %v697_v54 = vadd.f32 1e-05, %v695_v53 }
  0xe7   :  { %1090 = vrsqrt.f32 %v697_v54  ;;  %vm704_vm2 = vweird.f32 %v697_v54 }
  0xed   :  { %v1091_v55 = vpop.eup %1090 }
  0xee   :  { %v699_v56 = vmul.f32 %v1091_v55, %v697_v54  ;;  %vm705_vm1 = vweird.f32 %v1091_v55 }
  0xef   :  { %vm706_vm3 = vmor %vm704_vm2, %vm705_vm1 }
  0xf0   :  { %v700_v57 = vmul.f32 %v1091_v55, %v699_v56 }
  0xf2   :  { %v701_v58 = vmul.f32 0.5, %v700_v57 }
  0xf4   :  { %v702_v59 = vsub.f32 1.5, %v701_v58 }
  0xf6   :  { %v703_v60 = vmul.f32 %v1091_v55, %v702_v59 }
  0xf8   :  { %v707_v62 = vsel %vm706_vm3, %v1091_v55, %v703_v60 }
  0xf9   :  { %v708_v63 = vmul.f32 %v707_v62, %v696_v61 }
  0xfb   :  { %1092 = vtanh.f32 %v708_v63 }
 0x101   :  { %v1093_v1 = vpop.eup %1092 }
 0x102   :  { %v711_v2 = vmul.f32 %v1093_v1, %v710_v0 }
 0x104   :  { %v712_v3 = vmul.f32 0.5, %v711_v2 }
 0x106   :  { %v713_v4 = vmul.f32 %v712_v3, %v712_v3 }
 0x108   :  { %v714_v5 = vsel %vm675_vm0, %v713_v4, 0.0  ;;  %v722_v6 = vmul.f32 %v713_v4, %v713_v4 }
 0x109   :  { %v715_v7 = vrot.slane %v714_v5, 4 }
 0x10a   :  { %v723_v8 = vsel %vm675_vm0, %v722_v6, 0.0 }
 0x10b   :  { %v716_v9 = vadd.f32 %v715_v7, %v714_v5  ;;  %v724_v10 = vrot.slane %v723_v8, 4 }
 0x10d   :  { %v717_v11 = vrot.slane %v716_v9, 2  ;;  %v725_v12 = vadd.f32 %v724_v10, %v723_v8 }
 0x10f   :  { %v718_v13 = vadd.f32 %v717_v11, %v716_v9  ;;  %v726_v14 = vrot.slane %v725_v12, 2 }
 0x111   :  { %v719_v15 = vrot.slane %v718_v13, 1  ;;  %v727_v16 = vadd.f32 %v726_v14, %v725_v12 }
 0x113   :  { %v720_v17 = vadd.f32 %v719_v15, %v718_v13  ;;  %v728_v18 = vrot.slane %v727_v16, 1 }
 0x115   :  { %v721_v19 = vmul.f32 0.5, %v720_v17  ;;  %v729_v20 = vadd.f32 %v728_v18, %v727_v16 }
 0x117   :  { %v730_v21 = vmul.f32 0.5, %v729_v20  ;;  %v731_v22 = vmul.f32 %v721_v19, %v721_v19  ;;  %v734_v32 = vsub.f32 %v713_v4, %v721_v19 }
 0x119   :  { %v732_v23 = vsub.f32 %v730_v21, %v731_v22 }
 0x11b   :  { %v733_v24 = vmax.f32 %v732_v23, 0.0 }
 0x11d   :  { %v735_v25 = vadd.f32 1e-05, %v733_v24 }
 0x11f   :  { %1094 = vrsqrt.f32 %v735_v25  ;;  %vm742_vm5 = vweird.f32 %v735_v25 }
 0x125   :  { %v1095_v26 = vpop.eup %1094 }
 0x126   :  { %v737_v27 = vmul.f32 %v1095_v26, %v735_v25  ;;  %vm743_vm4 = vweird.f32 %v1095_v26 }
 0x127   :  { %vm744_vm6 = vmor %vm742_vm5, %vm743_vm4 }
 0x128   :  { %v738_v28 = vmul.f32 %v1095_v26, %v737_v27 }
 0x12a   :  { %v739_v29 = vmul.f32 0.5, %v738_v28 }
 0x12c   :  { %v740_v30 = vsub.f32 1.5, %v739_v29 }
 0x12e   :  { %v741_v31 = vmul.f32 %v1095_v26, %v740_v30 }
 0x130   :  { %v745_v33 = vsel %vm744_vm6, %v1095_v26, %v741_v31 }
 0x131   :  { %v746_v34 = vmul.f32 %v745_v33, %v734_v32 }
 0x133   :  { %747 = vst [vmem:[#allocation6] sm:$0x3] %v746_v34 }
 0x134   :  { %758 = dma.vmem_to_hbm [thread:$0]  %s754_s25, 32, %s756_s28, [#allocation5]  }
 0x135   :  { %1146 = dma.done.wait [#allocation5], 32  }
 0x136   :  { %1147 = vsyncadd [#allocation5], 4294967264 }
 0x137   :  { %763 = vsyncpa [#allocation4], 1 }
 0x138   :  { %764 = vsyncpa [#allocation5], 1 }

</bundles_post_ra>
